<compile_context>
chip_gen: v6e
topology: v6e:2x2x1
jax: 0.10.0
libtpu: 0.0.40
codegen_flags: <defaults>
</compile_context>

<pallas_src>
import jax
import jax.numpy as jnp
from jax.experimental import pallas as pl
from jax.experimental.pallas import tpu as pltpu


def _drop_path_kernel(scale_ref, x_ref, o_ref):
    # scale_ref: (tB, 1)   per-sample factor (0 or 1/keep_prob), same dtype as x
    # x_ref:     (tB, tF)  input tile
    # o_ref:     (tB, tF)  output tile
    # Pure VPU elementwise multiply; (tB, 1) broadcasts across the lane axis.
    o_ref[...] = x_ref[...] * scale_ref[...]


def _pick_tile(n: int, unit: int, cap: int) -> int:
    """Largest multiple of `unit` that divides n (capped at `cap`); else the full dim."""
    if n % unit != 0:
        return n
    best = unit
    t = unit
    limit = min(n, cap)
    while t <= limit:
        if n % t == 0:
            best = t
        t += unit
    return best


def _drop_path_apply(x: jax.Array, scale: jax.Array) -> jax.Array:
    """out[b, ...] = x[b, ...] * scale[b], via a tiled Pallas elementwise kernel."""
    orig_shape = x.shape
    dtype = x.dtype
    B = orig_shape[0]
    F = 1
    for d in orig_shape[1:]:
        F *= d

    x2d = x.reshape(B, F)
    scale2d = scale.reshape(B, 1).astype(dtype)

    # Lane axis in multiples of 128, sublane axis in multiples of 8 where divisible.
    # f32 worst case: 256 * 2048 * 4 B = 2 MiB per tile -> ~8 MiB with in/out
    # double-buffering, well under every generation's scoped-VMEM default.
    tF = _pick_tile(F, 128, 2048)
    tB = _pick_tile(B, 8, 256)

    grid = (pl.cdiv(B, tB), pl.cdiv(F, tF))

    itemsize = jnp.dtype(dtype).itemsize
    cost = pl.CostEstimate(
        flops=B * F,                          # one multiply per element
        transcendentals=0,
        bytes_accessed=(2 * B * F + B) * itemsize,
    )

    out = pl.pallas_call(
        _drop_path_kernel,
        out_shape=jax.ShapeDtypeStruct((B, F), dtype),
        grid=grid,
        in_specs=[
            pl.BlockSpec((tB, 1), lambda i, j: (i, 0)),    # per-sample scale
            pl.BlockSpec((tB, tF), lambda i, j: (i, j)),   # x tile
        ],
        out_specs=pl.BlockSpec((tB, tF), lambda i, j: (i, j)),
        compiler_params=pltpu.CompilerParams(
            dimension_semantics=("parallel", "parallel"),
        ),
        cost_estimate=cost,
    )(scale2d, x2d)

    return out.reshape(orig_shape)


def drop_path(x, drop_prob: float = 0.0, *, key=None, training: bool = False,
              scale_by_keep: bool = True):
    """Functional DropPath matching the PyTorch reference."""
    if drop_prob == 0.0 or not training:
        return x
    if key is None:
        raise ValueError("A PRNG key is required when training with drop_prob > 0.")
    keep_prob = 1.0 - drop_prob
    B = x.shape[0]
    # Per-sample Bernoulli mask (B tiny values) — generated with jax.random in the
    # wrapper so the kernel itself is deterministic and exactly checkable.
    mask = jax.random.bernoulli(key, p=keep_prob, shape=(B,)).astype(x.dtype)
    if keep_prob > 0.0 and scale_by_keep:
        scale = mask / jnp.asarray(keep_prob, dtype=x.dtype)
    else:
        scale = mask
    return _drop_path_apply(x, scale)


class DropPath:
    """Drop paths (Stochastic Depth) per sample — Pallas-backed forward."""

    def __init__(self, drop_prob: float = 0.0, scale_by_keep: bool = True):
        self.drop_prob = drop_prob
        self.scale_by_keep = scale_by_keep

    def __call__(self, x, *, key=None, training: bool = False):
        return drop_path(x, self.drop_prob, key=key, training=training,
                         scale_by_keep=self.scale_by_keep)


if __name__ == "__main__":
    key = jax.random.PRNGKey(0)
    k_x, k_mask = jax.random.split(key)

    B, C, H, W = 2, 4, 16, 16          # F = C*H*W = 1024 (lane-dense, multiple of 128)
    x = jax.random.normal(k_x, (B, C, H, W), dtype=jnp.float32)

    drop_prob = 0.25
    module = DropPath(drop_prob=drop_prob, scale_by_keep=True)

    # Training path: runs the Pallas kernel.
    out = module(x, key=k_mask, training=True)
    out = jax.block_until_ready(out)

    # Pure-JAX reference with the identical mask.
    keep_prob = 1.0 - drop_prob
    mask = jax.random.bernoulli(k_mask, p=keep_prob, shape=(B,)).astype(x.dtype)
    ref = x * (mask / keep_prob).reshape(B, 1, 1, 1)

    assert out.shape == x.shape, out.shape
    assert jnp.allclose(out, ref, atol=1e-6, rtol=1e-6), "mismatch vs reference"

    # Eval / drop_prob==0 path must be the identity (no kernel launched).
    out_eval = module(x, key=k_mask, training=False)
    assert jnp.array_equal(jax.block_until_ready(out_eval), x)

    print("KERNEL_OK")
</pallas_src>

<mosaic_0001>
module attributes {stable_mosaic.version = 11 : i64} {
  func.func @_drop_path_kernel(%arg0: i32, %arg1: i32, %arg2: memref<2x1xf32, #tpu.memory_space<vmem>>, %arg3: memref<2x1024xf32, #tpu.memory_space<vmem>>, %arg4: memref<2x1024xf32, #tpu.memory_space<vmem>>) attributes {dimension_semantics = [#tpu.dimension_semantics<parallel>, #tpu.dimension_semantics<parallel>], iteration_bounds = array<i64: 1, 1>, scalar_prefetch = 0 : i64, scratch_operands = 0 : i64, tpu.core_type = #tpu.core_type<tc>, window_params = [{transform_indices = @transform_0, window_bounds = array<i64: 2, 1>}, {transform_indices = @transform_1, window_bounds = array<i64: 2, 1024>}, {transform_indices = @transform_2, window_bounds = array<i64: 2, 1024>}]} {
    %c0 = arith.constant 0 : index
    %c0_0 = arith.constant 0 : index
    %0 = vector.load %arg3[%c0, %c0_0] : memref<2x1024xf32, #tpu.memory_space<vmem>>, vector<2x1024xf32>
    %c0_1 = arith.constant 0 : index
    %c0_2 = arith.constant 0 : index
    %1 = vector.load %arg2[%c0_1, %c0_2] : memref<2x1xf32, #tpu.memory_space<vmem>>, vector<2x1xf32>
    %2 = vector.broadcast %1 : vector<2x1xf32> to vector<2x1024xf32>
    %3 = arith.mulf %0, %2 : vector<2x1024xf32>
    %c0_3 = arith.constant 0 : index
    %c0_4 = arith.constant 0 : index
    %4 = vector.load %arg4[%c0_3, %c0_4] : memref<2x1024xf32, #tpu.memory_space<vmem>>, vector<2x1024xf32>
    tpu.vector_store %arg4[%c0_3, %c0_4], %3 {strides = array<i32>} : memref<2x1024xf32, #tpu.memory_space<vmem>>, vector<2x1024xf32>,
    return
  }
  func.func @transform_0(%arg0: i32, %arg1: i32) -> (i32, i32) {
    %c0_i32 = arith.constant 0 : i32
    %c0_i32_0 = arith.constant 0 : i32
    return %arg0, %c0_i32 : i32, i32
  }
  func.func @transform_1(%arg0: i32, %arg1: i32) -> (i32, i32) {
    %c0_i32 = arith.constant 0 : i32
    return %arg0, %arg1 : i32, i32
  }
  func.func @transform_2(%arg0: i32, %arg1: i32) -> (i32, i32) {
    %c0_i32 = arith.constant 0 : i32
    return %arg0, %arg1 : i32, i32
  }
}

</mosaic_0001>

<bundles_post_ra>
// kernel: tpu_custom_call.1
= control target key start
LH: loop header
LB: loop body
LE: loop exit
PB: predicated region body
PF: predicated region fallthrough
CT: control target
= control target key end

     0   :  { %7 = vsyncpa [#allocation3], 0  ;;  %s135_s0 = inlined_call_operand.vmem [shape: f32[2,1], index: 0, kind: input, shape index: {}]   ;;  %s136_s1 = inlined_call_operand.hbm [shape: f32[2,1024], index: 1, kind: input, shape index: {}]   ;;  %s137_s2 = inlined_call_operand.hbm [shape: f32[2,1024], index: 2, kind: output, shape index: {}]  }
   0x1   :  { %8 = vsyncpa [#allocation4], 0  ;;  %s107_s9 = smov [#allocation2]  }
   0x2   :  { %s17_s10 = sshll.u32 %s107_s9, 4  ;;  %s18_s10 = int_to_ptr.vmem [resolvable:$true] %s17_s10 }
   0x3   :  { %s71_s11 = scalar_lea.vmem %s18_s10, 256  ;;  %p76_p1 = scmp.lt.s32.totalorder %s18_s10, %s18_s10 }
   0x4   :  { %p72_p0 = scmp.ne.s32.totalorder %s18_s10, %s71_s11  ;;  %p77_p2 = scmp.lt.s32.totalorder %s71_s11, %s71_s11 }
   0x6   :  { %p78_p3 = por %p77_p2, %p76_p1 }
   0x8   :  { %p79_p4 = pnand %p78_p3, %p72_p0 }
   0xa   :  { %82 = shalt.err (!%p79_p4)
}
   0xb   :  { %20 = dma.hbm_to_vmem [thread:$0]  %s136_s1, 256, %s18_s10, [#allocation3]  }
   0xc   :  { %103 = dma.done.wait [#allocation3], 256  }
   0xd   :  { %104 = vsyncadd [#allocation3], 4294967040  ;;  %v108_v0 = vmov 0   ;;  %v26_v1 = vld [vmem:[%s135_s0] sm:$0x3]  ;;  %v34_v4 = vlaneseq  ;;  %v25_v10 = vld [vmem:[#allocation2 + $0x8] sm:$0xff] }
   0xe   :  { %62 = vset.pattern.permute.xlu0 %v108_v0  ;;  %v109_v2 = vmov 269488144   ;;  %v24_v9 = vld [vmem:[#allocation2] sm:$0xff]  ;;  %s110_s16 = smov [#allocation5]  }
   0xf   :  { %29 = vperm.xlu0 %62, %v26_v1   ;;  %v32_v3 = vunpack.c.l.s4 %v109_v2  ;;  %v35_v6 = vshrl.u32 %v34_v4, 7  ;;  %s49_s1 = sshll.u32 %s110_s16, 4  ;;  %s50_s1 = int_to_ptr.vmem [resolvable:$true] %s49_s1 }
  0x10   :  { %s83_s17 = scalar_lea.vmem %s50_s1, 256  ;;  %p88_p6 = scmp.lt.s32.totalorder %s50_s1, %s50_s1 }
  0x11   :  { %v33_v5 = vunpack.c.0.s8 %v32_v3  ;;  %p84_p5 = scmp.ne.s32.totalorder %s50_s1, %s83_s17  ;;  %p89_p7 = scmp.lt.s32.totalorder %s83_s17, %s83_s17 }
  0x13   :  { %v36_v7 = vsub.s32 %v33_v5, %v35_v6  ;;  %p90_p8 = por %p89_p7, %p88_p6 }
  0x15   :  { %p91_p9 = pnand %p90_p8, %p84_p5 }
  0x8a   :  { %v30_v8 = vpop.permute.xlu0 %29 }
  0x8b   :  { %v37_v11 = vrot.slane %v30_v8, %v36_v7 }
  0x8d   :  { %v39_v12 = vmul.f32 %v37_v11, %v24_v9  ;;  %v40_v13 = vmul.f32 %v37_v11, %v25_v10 }
  0x8f   :  { %41 = vst [vmem:[#allocation5] sm:$0xff] %v39_v12  ;;  %42 = vst [vmem:[#allocation5 + $0x8] sm:$0xff] %v40_v13 }
  0x90   :  { %94 = shalt.err (!%p91_p9)
}
  0x91   :  { %52 = dma.vmem_to_hbm [thread:$0]  %s50_s1, 256, %s137_s2, [#allocation4]  }
  0x92   :  { %105 = dma.done.wait [#allocation4], 256  }
  0x93   :  { %106 = vsyncadd [#allocation4], 4294967040 }
  0x94   :  { %56 = vsyncpa [#allocation3], 1 }
  0x95   :  { %57 = vsyncpa [#allocation4], 1 }

</bundles_post_ra>
